<compile_context>
chip_gen: v5e
topology: v5e:2x2
jax: 0.10.0
libtpu: 0.0.40
codegen_flags: <defaults>
</compile_context>

<pallas_src>
import numpy as np
import jax
import jax.numpy as jnp
from jax.experimental import pallas as pl
from jax.experimental.pallas import tpu as pltpu

LANE = 128
NEG_INF = -1e30


def _round_up(n, m):
    return ((n + m - 1) // m) * m


# --------------------------------------------------------------------------- #
# Fused kernel: 3 convs-as-matmuls + bias + relu + dropout + softmax           #
# --------------------------------------------------------------------------- #
def _convnet_kernel(x_ref, m0_ref, b0_ref, m1_ref, b1_ref, m2_ref, b2_ref,
                    mask_ref, o_ref):
    # conv0 (dense Toeplitz matmul over the flattened [C*F*T] input) + relu
    x = x_ref[...]                                                    # [tB, D_in] bf16
    h0 = jnp.dot(x, m0_ref[...], preferred_element_type=jnp.float32) + b0_ref[...]
    h0 = jnp.maximum(h0, 0.0)                                         # [tB, 128] f32

    # conv1 (1x6, stride 3) + relu + dropout (pre-scaled keep mask, training semantics)
    h1 = jnp.dot(h0.astype(jnp.bfloat16), m1_ref[...],
                 preferred_element_type=jnp.float32) + b1_ref[...]
    h1 = jnp.maximum(h1, 0.0)
    h1 = h1 * mask_ref[...]                                           # [tB, 128] f32

    # conv2; padded class columns carry a -1e30 bias -> exp() underflows to 0 in softmax
    logits = jnp.dot(h1.astype(jnp.bfloat16), m2_ref[...],
                     preferred_element_type=jnp.float32) + b2_ref[...]

    # softmax over the flattened output (dim=1); lane-dense [tB, 128] store
    m = jnp.max(logits, axis=1, keepdims=True)
    e = jnp.exp(logits - m)
    o_ref[...] = e * (1.0 / jnp.sum(e, axis=1, keepdims=True))


# --------------------------------------------------------------------------- #
# Wrapper: batch-tiled pallas_call                                             #
# --------------------------------------------------------------------------- #
def convnet_experimental_forward(x, params, drop_mask=None, *, tile_b=256):
    """x: [B, C, F, T] f32 -> softmax probabilities [B, n_out] f32."""
    B = x.shape[0]
    m0, b0 = params["m0"], params["b0"]
    m1, b1 = params["m1"], params["b1"]
    m2, b2 = params["m2"], params["b2"]
    d_in, h0p = m0.shape
    h1p = m1.shape[1]
    outp = m2.shape[1]
    out_dim = params["out_dim"]

    if drop_mask is None:                       # eval mode: dropout is identity
        drop_mask = jnp.ones((B, h1p), jnp.float32)

    # batch tiling (multiple of 8 sublanes); pad B so the grid divides evenly
    tile = max(8, min(_round_up(tile_b, 8), _round_up(B, 8)))
    b_pad = _round_up(B, tile)

    xf = x.reshape(B, -1).astype(jnp.bfloat16)          # bf16: halve HBM bytes for x
    mask = drop_mask.astype(jnp.float32)
    if b_pad != B:
        xf = jnp.pad(xf, ((0, b_pad - B), (0, 0)))
        mask = jnp.pad(mask, ((0, b_pad - B), (0, 0)), constant_values=1.0)

    cost = pl.CostEstimate(
        flops=2 * b_pad * (d_in * h0p + h0p * h1p + h1p * outp),
        transcendentals=b_pad * outp,
        bytes_accessed=(xf.size * 2 + mask.size * 4 + b_pad * outp * 4
                        + (m0.size + m1.size + m2.size) * 2
                        + (b0.size + b1.size + b2.size) * 4),
    )

    out = pl.pallas_call(
        _convnet_kernel,
        out_shape=jax.ShapeDtypeStruct((b_pad, outp), jnp.float32),
        grid=(b_pad // tile,),
        in_specs=[
            pl.BlockSpec((tile, d_in), lambda i: (i, 0)),    # x tile (pipelined)
            pl.BlockSpec((d_in, h0p), lambda i: (0, 0)),     # conv0 matrix (resident)
            pl.BlockSpec((1, h0p), lambda i: (0, 0)),        # conv0 bias
            pl.BlockSpec((h0p, h1p), lambda i: (0, 0)),      # conv1 matrix (resident)
            pl.BlockSpec((1, h1p), lambda i: (0, 0)),        # conv1 bias
            pl.BlockSpec((h1p, outp), lambda i: (0, 0)),     # conv2 matrix (resident)
            pl.BlockSpec((1, outp), lambda i: (0, 0)),       # conv2 bias (+ -1e30 pads)
            pl.BlockSpec((tile, h1p), lambda i: (i, 0)),     # dropout keep-mask tile
        ],
        out_specs=pl.BlockSpec((tile, outp), lambda i: (i, 0)),
        compiler_params=pltpu.CompilerParams(
            dimension_semantics=("parallel",),               # megacore on v7x
            vmem_limit_bytes=32 * 1024 * 1024,               # safe on 64 MiB v7x VMEM
        ),
        cost_estimate=cost,
    )(xf, m0, b0, m1, b1, m2, b2, mask)

    return out[:B, :out_dim]


# --------------------------------------------------------------------------- #
# Host-side parameter construction (PyTorch-style init + conv -> dense matrix) #
# --------------------------------------------------------------------------- #
def build_params(key, data_size):
    C, F, T = data_size
    feature_maps = [(C, 4), (4, 8), (8, 5)]
    kernel_sizes = [(F, 20), (1, 6), (1, 9)]
    strides = [(1, 1), (1, 3), (1, 1)]

    # conv layer spatial dims (VALID padding), as in get_conv_layer_dimensions
    dims = [(F, T)]
    for k, s in zip(kernel_sizes, strides):
        h, w = dims[-1]
        dims.append(((h - k[0]) // s[0] + 1, (w - k[1]) // s[1] + 1))

    ks = jax.random.split(key, 2 * len(feature_maps))
    weights, biases = [], []
    for li, ((cin, cout), k) in enumerate(zip(feature_maps, kernel_sizes)):
        bound = 1.0 / np.sqrt(cin * k[0] * k[1])      # nn.Conv2d default init
        w = jax.random.uniform(ks[2 * li], (cout, cin, k[0], k[1]), jnp.float32,
                               -bound, bound)
        b = jax.random.uniform(ks[2 * li + 1], (cout,), jnp.float32, -bound, bound)
        weights.append(np.asarray(w))
        biases.append(np.asarray(b))

    def conv_matrix(w, in_hw, stride):
        """Exact dense matrix of a VALID Conv2d acting on the row-major flattened input."""
        O, Cc, KH, KW = w.shape
        H, W = in_hw
        OH = (H - KH) // stride[0] + 1
        OW = (W - KW) // stride[1] + 1
        M = np.zeros((Cc * H * W, O * OH * OW), np.float32)
        for o in range(O):
            for oh in range(OH):
                for ow in range(OW):
                    j = (o * OH + oh) * OW + ow
                    for c in range(Cc):
                        for kh in range(KH):
                            for kw in range(KW):
                                i = (c * H + oh * stride[0] + kh) * W + ow * stride[1] + kw
                                M[i, j] = w[o, c, kh, kw]
        return M, (O, OH, OW)

    mats, bvecs, flat_dims = [], [], []
    for li, (w, b, s) in enumerate(zip(weights, biases, strides)):
        M, osh = conv_matrix(w, dims[li], s)
        mats.append(M)
        bvecs.append(np.repeat(b, osh[1] * osh[2]))
        flat_dims.append(osh[0] * osh[1] * osh[2])

    d0, d1, d2 = flat_dims
    h0p, h1p, outp = (_round_up(d, LANE) for d in flat_dims)   # lane-dense padding

    m0 = np.zeros((C * F * T, h0p), np.float32); m0[:, :d0] = mats[0]
    b0 = np.zeros((1, h0p), np.float32);         b0[0, :d0] = bvecs[0]
    m1 = np.zeros((h0p, h1p), np.float32);       m1[:d0, :d1] = mats[1]
    b1 = np.zeros((1, h1p), np.float32);         b1[0, :d1] = bvecs[1]
    m2 = np.zeros((h1p, outp), np.float32);      m2[:d1, :d2] = mats[2]
    b2 = np.full((1, outp), NEG_INF, np.float32); b2[0, :d2] = bvecs[2]

    return {
        "m0": jnp.asarray(m0, jnp.bfloat16), "b0": jnp.asarray(b0),
        "m1": jnp.asarray(m1, jnp.bfloat16), "b1": jnp.asarray(b1),
        "m2": jnp.asarray(m2, jnp.bfloat16), "b2": jnp.asarray(b2),
        "out_dim": d2, "h1_dim": d1, "h1_pad": h1p,
        "conv_w": [jnp.asarray(w) for w in weights],
        "conv_b": [jnp.asarray(b) for b in biases],
        "strides": strides,
    }


# --------------------------------------------------------------------------- #
# Pure-JAX (f32, lax.conv) reference of the PyTorch forward pass               #
# --------------------------------------------------------------------------- #
def reference_forward(x, params, drop_mask=None):
    relu_active = [True, True, False]
    dropout_active = [False, True, False]
    h = x
    for li, (w, b, s) in enumerate(zip(params["conv_w"], params["conv_b"],
                                       params["strides"])):
        h = jax.lax.conv_general_dilated(
            h, w, window_strides=s, padding="VALID",
            dimension_numbers=("NCHW", "OIHW", "NCHW"))
        h = h + b.reshape(1, -1, 1, 1)
        if relu_active[li]:
            h = jnp.maximum(h, 0.0)
        if dropout_active[li] and drop_mask is not None:
            h = h * drop_mask[:, :params["h1_dim"]].reshape(h.shape)
    h = h.reshape(h.shape[0], -1)
    return jax.nn.softmax(h, axis=1)


if __name__ == "__main__":
    key = jax.random.PRNGKey(0)
    k_x, k_p, k_d = jax.random.split(key, 3)

    # small MFCC-like shapes: (n_channels, n_features, n_frames)
    data_size = (1, 13, 50)
    B = 32

    x = jax.random.normal(k_x, (B,) + data_size, dtype=jnp.float32)
    params = build_params(k_p, data_size)

    # training-mode dropout mask (p=0.5), generated host-side, independent per batch row
    p_drop = 0.5
    keep = jax.random.bernoulli(k_d, 1.0 - p_drop, (B, params["h1_pad"]))
    drop_mask = keep.astype(jnp.float32) / (1.0 - p_drop)

    # tile_b=8 so the small demo batch exercises a multi-step (pipelined) grid
    out = convnet_experimental_forward(x, params, drop_mask, tile_b=8)
    jax.block_until_ready(out)

    ref = reference_forward(x, params, drop_mask)

    assert out.shape == (B, params["out_dim"])
    assert bool(jnp.allclose(jnp.sum(out, axis=1), 1.0, atol=1e-4))
    # bf16 matmul path vs f32 conv reference: probabilities agree to a few 1e-3
    assert bool(jnp.allclose(out, ref, atol=3e-2)), float(jnp.max(jnp.abs(out - ref)))
    print("KERNEL_OK")
</pallas_src>

<mosaic_0001>
module attributes {stable_mosaic.version = 11 : i64} {
  func.func @_convnet_kernel(%arg0: i32, %arg1: memref<8x650xbf16, #tpu.memory_space<vmem>>, %arg2: memref<650x128xbf16, #tpu.memory_space<vmem>>, %arg3: memref<1x128xf32, #tpu.memory_space<vmem>>, %arg4: memref<128x128xbf16, #tpu.memory_space<vmem>>, %arg5: memref<1x128xf32, #tpu.memory_space<vmem>>, %arg6: memref<128x128xbf16, #tpu.memory_space<vmem>>, %arg7: memref<1x128xf32, #tpu.memory_space<vmem>>, %arg8: memref<8x128xf32, #tpu.memory_space<vmem>>, %arg9: memref<8x128xf32, #tpu.memory_space<vmem>>) attributes {dimension_semantics = [#tpu.dimension_semantics<parallel>], iteration_bounds = array<i64: 4>, scalar_prefetch = 0 : i64, scratch_operands = 0 : i64, tpu.core_type = #tpu.core_type<tc>, window_params = [{transform_indices = @transform_0, window_bounds = array<i64: 8, 650>}, {pipeline_mode = #tpu.pipeline_mode<synchronous>, transform_indices = @transform_1, window_bounds = array<i64: 650, 128>}, {pipeline_mode = #tpu.pipeline_mode<synchronous>, transform_indices = @transform_2, window_bounds = array<i64: 1, 128>}, {pipeline_mode = #tpu.pipeline_mode<synchronous>, transform_indices = @transform_3, window_bounds = array<i64: 128, 128>}, {pipeline_mode = #tpu.pipeline_mode<synchronous>, transform_indices = @transform_4, window_bounds = array<i64: 1, 128>}, {pipeline_mode = #tpu.pipeline_mode<synchronous>, transform_indices = @transform_5, window_bounds = array<i64: 128, 128>}, {pipeline_mode = #tpu.pipeline_mode<synchronous>, transform_indices = @transform_6, window_bounds = array<i64: 1, 128>}, {transform_indices = @transform_7, window_bounds = array<i64: 8, 128>}, {transform_indices = @transform_8, window_bounds = array<i64: 8, 128>}]} {
    %c0 = arith.constant 0 : index
    %c0_0 = arith.constant 0 : index
    %0 = vector.load %arg1[%c0, %c0_0] : memref<8x650xbf16, #tpu.memory_space<vmem>>, vector<8x650xbf16>
    %c0_1 = arith.constant 0 : index
    %c0_2 = arith.constant 0 : index
    %1 = vector.load %arg2[%c0_1, %c0_2] : memref<650x128xbf16, #tpu.memory_space<vmem>>, vector<650x128xbf16>
    %cst = arith.constant dense<0.000000e+00> : vector<8x128xf32>
    %2 = tpu.matmul %0, %1, %cst {dimension_numbers = #tpu.dot_dimension_numbers<[1], [0], [0], [1], [0, 0, 1, 1], [], []>} : vector<8x650xbf16>, vector<650x128xbf16>, vector<8x128xf32> -> vector<8x128xf32>
    %c0_3 = arith.constant 0 : index
    %c0_4 = arith.constant 0 : index
    %3 = vector.load %arg3[%c0_3, %c0_4] : memref<1x128xf32, #tpu.memory_space<vmem>>, vector<1x128xf32>
    %4 = vector.broadcast %3 : vector<1x128xf32> to vector<8x128xf32>
    %5 = arith.addf %2, %4 : vector<8x128xf32>
    %cst_5 = arith.constant 0.000000e+00 : f32
    %6 = vector.broadcast %cst_5 : f32 to vector<8x128xf32>
    %7 = arith.maximumf %5, %6 : vector<8x128xf32>
    %8 = arith.truncf %7 : vector<8x128xf32> to vector<8x128xbf16>
    %c0_6 = arith.constant 0 : index
    %c0_7 = arith.constant 0 : index
    %9 = vector.load %arg4[%c0_6, %c0_7] : memref<128x128xbf16, #tpu.memory_space<vmem>>, vector<128x128xbf16>
    %cst_8 = arith.constant dense<0.000000e+00> : vector<8x128xf32>
    %10 = tpu.matmul %8, %9, %cst_8 {dimension_numbers = #tpu.dot_dimension_numbers<[1], [0], [0], [1], [0, 0, 1, 1], [], []>} : vector<8x128xbf16>, vector<128x128xbf16>, vector<8x128xf32> -> vector<8x128xf32>
    %c0_9 = arith.constant 0 : index
    %c0_10 = arith.constant 0 : index
    %11 = vector.load %arg5[%c0_9, %c0_10] : memref<1x128xf32, #tpu.memory_space<vmem>>, vector<1x128xf32>
    %12 = vector.broadcast %11 : vector<1x128xf32> to vector<8x128xf32>
    %13 = arith.addf %10, %12 : vector<8x128xf32>
    %cst_11 = arith.constant 0.000000e+00 : f32
    %14 = vector.broadcast %cst_11 : f32 to vector<8x128xf32>
    %15 = arith.maximumf %13, %14 : vector<8x128xf32>
    %c0_12 = arith.constant 0 : index
    %c0_13 = arith.constant 0 : index
    %16 = vector.load %arg8[%c0_12, %c0_13] : memref<8x128xf32, #tpu.memory_space<vmem>>, vector<8x128xf32>
    %17 = arith.mulf %15, %16 : vector<8x128xf32>
    %18 = arith.truncf %17 : vector<8x128xf32> to vector<8x128xbf16>
    %c0_14 = arith.constant 0 : index
    %c0_15 = arith.constant 0 : index
    %19 = vector.load %arg6[%c0_14, %c0_15] : memref<128x128xbf16, #tpu.memory_space<vmem>>, vector<128x128xbf16>
    %cst_16 = arith.constant dense<0.000000e+00> : vector<8x128xf32>
    %20 = tpu.matmul %18, %19, %cst_16 {dimension_numbers = #tpu.dot_dimension_numbers<[1], [0], [0], [1], [0, 0, 1, 1], [], []>} : vector<8x128xbf16>, vector<128x128xbf16>, vector<8x128xf32> -> vector<8x128xf32>
    %c0_17 = arith.constant 0 : index
    %c0_18 = arith.constant 0 : index
    %21 = vector.load %arg7[%c0_17, %c0_18] : memref<1x128xf32, #tpu.memory_space<vmem>>, vector<1x128xf32>
    %22 = vector.broadcast %21 : vector<1x128xf32> to vector<8x128xf32>
    %23 = arith.addf %20, %22 : vector<8x128xf32>
    %cst_19 = arith.constant dense<0xFF800000> : vector<8xf32>
    %24 = vector.multi_reduction <maximumf>, %23, %cst_19 [1] : vector<8x128xf32> to vector<8xf32>
    %25 = vector.shape_cast %24 : vector<8xf32> to vector<8x1xf32>
    %26 = vector.broadcast %25 : vector<8x1xf32> to vector<8x128xf32>
    %27 = arith.subf %23, %26 : vector<8x128xf32>
    %28 = math.exp %27 : vector<8x128xf32>
    %cst_20 = arith.constant dense<0.000000e+00> : vector<8xf32>
    %29 = vector.multi_reduction <add>, %28, %cst_20 [1] : vector<8x128xf32> to vector<8xf32>
    %30 = vector.shape_cast %29 : vector<8xf32> to vector<8x1xf32>
    %cst_21 = arith.constant 1.000000e+00 : f32
    %31 = vector.broadcast %cst_21 : f32 to vector<8x1xf32>
    %32 = arith.divf %31, %30 : vector<8x1xf32>
    %33 = vector.broadcast %32 : vector<8x1xf32> to vector<8x128xf32>
    %34 = arith.mulf %28, %33 : vector<8x128xf32>
    %c0_22 = arith.constant 0 : index
    %c0_23 = arith.constant 0 : index
    %35 = vector.load %arg9[%c0_22, %c0_23] : memref<8x128xf32, #tpu.memory_space<vmem>>, vector<8x128xf32>
    tpu.vector_store %arg9[%c0_22, %c0_23], %34 {strides = array<i32>} : memref<8x128xf32, #tpu.memory_space<vmem>>, vector<8x128xf32>,
    return
  }
  func.func @transform_0(%arg0: i32) -> (i32, i32) {
    %c0_i32 = arith.constant 0 : i32
    %c0_i32_0 = arith.constant 0 : i32
    return %arg0, %c0_i32 : i32, i32
  }
  func.func @transform_1(%arg0: i32) -> (i32, i32) {
    %c0_i32 = arith.constant 0 : i32
    %c0_i32_0 = arith.constant 0 : i32
    %c0_i32_1 = arith.constant 0 : i32
    return %c0_i32, %c0_i32_0 : i32, i32
  }
  func.func @transform_2(%arg0: i32) -> (i32, i32) {
    %c0_i32 = arith.constant 0 : i32
    %c0_i32_0 = arith.constant 0 : i32
    %c0_i32_1 = arith.constant 0 : i32
    return %c0_i32, %c0_i32_0 : i32, i32
  }
  func.func @transform_3(%arg0: i32) -> (i32, i32) {
    %c0_i32 = arith.constant 0 : i32
    %c0_i32_0 = arith.constant 0 : i32
    %c0_i32_1 = arith.constant 0 : i32
    return %c0_i32, %c0_i32_0 : i32, i32
  }
  func.func @transform_4(%arg0: i32) -> (i32, i32) {
    %c0_i32 = arith.constant 0 : i32
    %c0_i32_0 = arith.constant 0 : i32
    %c0_i32_1 = arith.constant 0 : i32
    return %c0_i32, %c0_i32_0 : i32, i32
  }
  func.func @transform_5(%arg0: i32) -> (i32, i32) {
    %c0_i32 = arith.constant 0 : i32
    %c0_i32_0 = arith.constant 0 : i32
    %c0_i32_1 = arith.constant 0 : i32
    return %c0_i32, %c0_i32_0 : i32, i32
  }
  func.func @transform_6(%arg0: i32) -> (i32, i32) {
    %c0_i32 = arith.constant 0 : i32
    %c0_i32_0 = arith.constant 0 : i32
    %c0_i32_1 = arith.constant 0 : i32
    return %c0_i32, %c0_i32_0 : i32, i32
  }
  func.func @transform_7(%arg0: i32) -> (i32, i32) {
    %c0_i32 = arith.constant 0 : i32
    %c0_i32_0 = arith.constant 0 : i32
    return %arg0, %c0_i32 : i32, i32
  }
  func.func @transform_8(%arg0: i32) -> (i32, i32) {
    %c0_i32 = arith.constant 0 : i32
    %c0_i32_0 = arith.constant 0 : i32
    return %arg0, %c0_i32 : i32, i32
  }
}

</mosaic_0001>

<bundles_post_ra>
// kernel: tpu_custom_call.1
= control target key start
LH: loop header
LB: loop body
LE: loop exit
PB: predicated region body
PF: predicated region fallthrough
CT: control target
= control target key end

     0   :  { %s2073_s0 = inlined_call_operand.hbm [shape: bf16[32,650], index: 0, kind: input, shape index: {}]   ;;  %s2074_s1 = inlined_call_operand.hbm [shape: bf16[650,128], index: 1, kind: input, shape index: {}]   ;;  %s2075_s2 = inlined_call_operand.vmem [shape: f32[1,128], index: 2, kind: input, shape index: {}]   ;;  %s2076_s3 = inlined_call_operand.hbm [shape: bf16[128,128], index: 3, kind: input, shape index: {}]   ;;  %s2077_s4 = inlined_call_operand.vmem [shape: f32[1,128], index: 4, kind: input, shape index: {}]   ;;  %s2078_s5 = inlined_call_operand.hbm [shape: bf16[128,128], index: 5, kind: input, shape index: {}]   ;;  %s2079_s6 = inlined_call_operand.vmem [shape: f32[1,128], index: 6, kind: input, shape index: {}]   ;;  %s2080_s7 = inlined_call_operand.hbm [shape: f32[32,128], index: 7, kind: input, shape index: {}]   ;;  %s2081_s8 = inlined_call_operand.hbm [shape: f32[32,128], index: 8, kind: output, shape index: {}]  }
   0x1   :  { %2094 = sst [smem:[#allocation22_spill]] %s2073_s0 }
   0x2   :  { %2095 = sst [smem:[#allocation23_spill]] %s2074_s1 }
   0x3   :  { %2096 = sst [smem:[#allocation24_spill]] %s2076_s3 }
   0x4   :  { %13 = vsyncpa [#allocation3], 0 }
   0x5   :  { %15 = vsyncpa [#allocation3 + $0x1], 0 }
   0x6   :  { %16 = vsyncpa [#allocation6], 0 }
   0x7   :  { %17 = vsyncpa [#allocation9], 0 }
   0x8   :  { %18 = vsyncpa [#allocation4], 0 }
   0x9   :  { %20 = vsyncpa [#allocation4 + $0x1], 0  ;;  %s1857_s27 = smov 0   ;;  %s1859_s28 = smov 0  }
   0xa   :  { %s1861_s29 = smov 0   ;;  %s1863_s30 = smov 0  }
   0xb LB: > { %2097 = sst [smem:[#allocation17_spill]] %s1793_s27  ;;  %s1881_s12 = sadd.s32 4294967295, %s1805_s30   ;;  %s1805_s30 = sphi %s1863_s30, %s2121_s30   ;;  %s1801_s29 = sphi %s1861_s29, %s2125_s29   ;;  %s1797_s28 = sphi %s1859_s28, %s2124_s28   ;;  %s1793_s27 = sphi %s1857_s27, %s2123_s27  }
   0xc   : > { %s2098_s1 = sld [smem:[#allocation23_spill]]  ;;  %p1179_p0 = scmp.ge.s32.totalorder %s1805_s30, 1 }
   0xd   : > { %p2093_p1 = scmp.eq.s32.totalorder %s1881_s12, 0  ;;  %p235_p2 = scmp.lt.s32.totalorder %s1805_s30, 5 }
   0xe   : > { %s1807_s14 = smov [#allocation5]   ;;  %s2082_s17 = smov 64  }
   0xf   : > { %p1886_p3 = pnand %p1179_p0, %p235_p2  ;;  %s248_s15 = sshll.u32 %s1807_s14, 4  ;;  %s249_s15 = int_to_ptr.vmem [resolvable:$true] %s248_s15 }
  0x10   : > { %s2084_s18 = smov 4   ;;  %s1178_s19 = sadd.s32 4294967294, %s1805_s30  }
  0x11   : > { %p1504_p4 = pneg %p1886_p3  ;;  %s1905_s20 = sadd.s32 1, %s1805_s30  }
  0x12   : > { %s246_s11 = sshll.u32 %s2098_s1, 4  ;;  %2101 = sst [smem:[#allocation18_spill]] %s1905_s20  ;;  %s247_s11 = int_to_ptr.hbm [resolvable:$true] %s246_s11 }
  0x13   : > { %p1894_p5 = pnand %p1504_p4, %p2093_p1  ;;  %s33_s21 = sadd.s32 1, %s1801_s29 }
  0x14   : > { %s30_s22 = ssub.s32 %s1805_s30, %s1905_s20  ;;  %p40_p6 = scmp.ne.s32.totalorder %s1801_s29, %s1797_s28 }
  0x15   : > { %1507 = dma.hbm_to_vmem [thread:$0]  (!%p1894_p5), %s247_s11, 5248, %s249_s15, [#allocation6], %s2082_s17, %s2082_s17, %s2084_s18  }
  0x16   : > { %p31_p7 = scmp.eq.s32.totalorder %s30_s22, 0  ;;  %p41_p8 = scmp.eq.s32.totalorder %s1805_s30, 0 }
  0x17   : > { %p46_p9 = scmp.ne.s32.totalorder %s1797_s28, %s1793_s27  ;;  %p222_p10 = scmp.eq.s32.totalorder %s1881_s12, 3 }
  0x18   : > { %s1917_s23 = scalar_select %p31_p7, %s1801_s29, %s33_s21  }
  0x19   : > { %p42_p11 = por %p41_p8, %p40_p6  ;;  %p1921_p12 = por %p2093_p1, %p46_p9 }
  0x1a   : > { %2102 = sst [smem:[#allocation19_spill]] %s1917_s23  ;;  %p1925_p13 = por %p222_p10, %p40_p6 }
  0x1b   : > { %p228_p0 = scmp.eq.s32.totalorder %s1178_s19, 3  ;;  %p1528_p2 = scmp.lt.s32.totalorder %s1805_s30, 4 }
  0x1c   : > { %s2104_s25 = scalar_select %p1925_p13, 1, 0 }
  0x1d   : > { %s299_s26 = sand.u32 1, %s1805_s30   ;;  %p1931_p4 = por %p228_p0, %p46_p9 }
  0x1e   : > { %2105 = sst [smem:[#allocation20_spill]] %s2104_s25  ;;  %s2089_s10 = sand.u32 1, %s1801_s29  }
  0x1f   : > { %s2106_s9 = scalar_select %p1931_p4, 1, 0 }
  0x20   : > { %s1484_s11 = smul.u32 24, %s1805_s30  ;;  %p1939_p7 = pnand %p1528_p2, %p42_p11 }
  0x21   : > { %2107 = sst [smem:[#allocation21_spill]] %s2106_s9  ;;  %s1483_s14 = smul.u32 24, %s2089_s10 }
  0x22   : > { %s2109_s0 = sld [smem:[#allocation22_spill]]  ;;  %s1949_s10 = scalar_lea.sflag [#allocation3], %s299_s26 }
  0x23   : > { %s2110_s3 = sld [smem:[#allocation24_spill]]  ;;  %s303_s20 = scalar_lea.vmem [#allocation2], %s1483_s14 }
  0x24   : > { %s312_s9 = sshll.u32 %s303_s20, 4  ;;  %p1611_p8 = pneg %p1939_p7  ;;  %s313_s9 = int_to_ptr.vmem [resolvable:$true] %s312_s9 }
  0x28   : > { %s308_s19 = scalar_lea.hbm %s2109_s0, %s1484_s11  ;;  %s1614_s18 = scalar_lea.hbm %s2109_s0, 96 }
  0x29   : > { %s263_s1 = sshll.u32 %s2110_s3, 4  ;;  %s310_s23 = sshll.u32 %s308_s19, 4  ;;  %s311_s23 = int_to_ptr.hbm [resolvable:$true] %s310_s23  ;;  %s264_s1 = int_to_ptr.hbm [resolvable:$true] %s263_s1 }
  0x2a   : > { %s1607_s27 = sshra.s32 %s311_s23, 4  ;;  %s1608_s27 = int_to_ptr.hbm [resolvable:$true] %s1607_s27 }
  0x2b   : > { %s1609_s25 = scalar_lea.hbm %s1608_s27, 24  ;;  %p1615_p11 = scmp.lt.s32.totalorder %s1608_s27, %s2109_s0 }
  0x2c   : > { %p1610_p6 = scmp.ne.s32.totalorder %s1608_s27, %s1609_s25  ;;  %p1616_p0 = scmp.lt.s32.totalorder %s1614_s18, %s1609_s25 }
  0x2e   : > { %p1612_p9 = pnand %p1611_p8, %p1610_p6  ;;  %p1617_p2 = por %p1616_p0, %p1615_p11 }
  0x30   : > { %p1613_p10 = pneg %p1612_p9 }
  0x32   : > { %p1618_p1 = pnand %p1617_p2, %p1613_p10 }
  0x34   : > { %1621 = shalt.err (!%p1618_p1)
}
  0x35   : > { %1517 = dma.hbm_to_vmem [thread:$0]  (!%p1939_p7), %s311_s23, 384, %s313_s9, %s1949_s10  }
  0x36   : > { %s1810_s20 = smov [#allocation7]   ;;  %s280_s11 = sshll.u32 %s2078_s5, 4  ;;  %s281_s11 = int_to_ptr.hbm [resolvable:$true] %s280_s11 }
  0x37   : > { %s265_s26 = sshll.u32 %s1810_s20, 4  ;;  %s2111_s27 = smov 4   ;;  %s266_s26 = int_to_ptr.vmem [resolvable:$true] %s265_s26 }
  0x38   : > { %s2112_s25 = smov 64   ;;  %s2113_s17 = sand.u32 1, %s1801_s29  }
  0x39   : > { %1510 = dma.hbm_to_vmem [thread:$0]  (!%p1894_p5), %s264_s1, 1024, %s266_s26, [#allocation6], %s2112_s25, %s2112_s25, %s2111_s27  }
  0x3a   : > { %s1185_s18 = sshll.u32 %s2113_s17, 3  ;;  %s1811_s21 = smov [#allocation8]  }
  0x3b   : > { %s282_s14 = sshll.u32 %s1811_s21, 4  ;;  %s1186_s23 = sshll.u32 %s1805_s30, 3  ;;  %s283_s14 = int_to_ptr.vmem [resolvable:$true] %s282_s14 }
  0x3c   : > { %1513 = dma.hbm_to_vmem [thread:$0]  (!%p1894_p5), %s281_s11, 1024, %s283_s14, [#allocation9], %s2112_s25, %s2112_s25, %s2111_s27  }
  0x3d   : > { %s327_s22 = scalar_lea.hbm %s2080_s7, %s1186_s23  ;;  %s323_s19 = scalar_lea.vmem [#allocation10], %s1185_s18 }
  0x3e   : > { %s331_s0 = sshll.u32 %s323_s19, 4  ;;  %s329_s3 = sshll.u32 %s327_s22, 4  ;;  %s332_s0 = int_to_ptr.vmem [resolvable:$true] %s331_s0  ;;  %s330_s3 = int_to_ptr.hbm [resolvable:$true] %s329_s3 }
  0x3f   : > { %s1697_s1 = sshra.s32 %s330_s3, 4  ;;  %s1704_s11 = scalar_lea.hbm %s2080_s7, 32  ;;  %s1698_s1 = int_to_ptr.hbm [resolvable:$true] %s1697_s1 }
  0x40   : > { %s1699_s26 = scalar_lea.hbm %s1698_s1, 8  ;;  %p1705_p5 = scmp.lt.s32.totalorder %s1698_s1, %s2080_s7 }
  0x41   : > { %p1700_p1 = scmp.ne.s32.totalorder %s1698_s1, %s1699_s26  ;;  %p1706_p10 = scmp.lt.s32.totalorder %s1704_s11, %s1699_s26 }
  0x43   : > { %p1702_p6 = pnand %p1700_p1, %p1611_p8  ;;  %p1707_p11 = por %p1706_p10, %p1705_p5 }
  0x45   : > { %p1703_p9 = pneg %p1702_p6 }
  0x47   : > { %p1708_p0 = pnand %p1707_p11, %p1703_p9 }
  0x49   : > { %1711 = shalt.err (!%p1708_p0)
}
  0x4a   : > { %1520 = dma.hbm_to_vmem [thread:$0]  (!%p1939_p7), %s330_s3, 128, %s332_s0, %s1949_s10  }
  0x4b   : > { %340 = sbr.rel (%p1886_p3) target bundleno = 828 (0x33c), region = 52  ;;  %s342_s18 = sand.u32 (!%p1886_p3), 1, %s1881_s12  }
  0x4c   : > { %s2000_s21 = sand.u32 (!%p1886_p3), 1, %s1797_s28   ;;  %s343_s23 = scalar_lea.sflag (!%p1886_p3), [#allocation3], %s342_s18 }
  0x4d   : > { %s1485_s14 = smul.u32 (!%p1886_p3), 24, %s2000_s21 }
  0x4f   : > { %s2003_s9 = scalar_lea.vmem (!%p1886_p3), [#allocation2], %s1485_s14 }
  0x50   : > { %1772 = dma.done.wait (%p1921_p12), %s343_s23, 384  }
  0x51   : > { %1774 = vsyncadd (%p1921_p12), %s343_s23, 4294966912  ;;  %p2114_p7 = scmp.eq.s32.totalorder %s1881_s12, 0 }
  0x53   : > { %1776 = dma.done.wait (%p2114_p7), [#allocation6], 6272   ;;  %p2115_p3 = pmov %p2114_p7 }
  0x55   : > { %1778 = vsyncadd (%p2115_p3), [#allocation6], 4294961024  ;;  %p2116_p8 = pmov %p2115_p3 }
  0x56   : > { %p2117_p2 = pmov %p2115_p3 }
  0x57   : > { %1780 = dma.done.wait (%p2116_p8), [#allocation9], 1024  }
  0x58   : > { %1782 = vsyncadd (%p2117_p2), [#allocation9], 4294966272  ;;  %s1191_s0 = sshll.u32 %s2000_s21, 3 }
  0x59   : > { %s2020_s3 = scalar_lea.vmem [#allocation10], %s1191_s0 }
  0x5a   : > { %1784 = dma.done.wait (%p1921_p12), %s343_s23, 128  }
  0x5b   : > { %1786 = vsyncadd (%p1921_p12), %s343_s23, 4294967168  ;;  %v1433_v0 = vld [vmem:[#allocation5 + $0x38] sm:$0xff]  ;;  %v1432_v3 = vld [vmem:[#allocation5 + $0x30] sm:$0xff]  ;;  %vm769_vm0 = vcmask 1044480   ;;  %vm765_vm1 = vcmask 80896   ;;  %s1423_s19 = sshll.u32 %s1881_s12, 3 }
  0x5c   : > { %v1441_v1 = vld [vmem:[#allocation5 + $0x78] sm:$0xff]  ;;  %773 = vmatpush.bf16.msra.mxu0 %v1433_v0  ;;  %v1440_v4 = vld [vmem:[#allocation5 + $0x70] sm:$0xff]  ;;  %v1431_v8 = vld [vmem:[#allocation5 + $0x28] sm:$0xff]  ;;  %s1054_s16 = scalar_lea.hbm %s2081_s8, %s1423_s19  ;;  %s409_s11 = scalar_lea.vmem [#allocation11], %s1191_s0 }
  0x5d   : > { %v1449_v2 = vld [vmem:[#allocation5 + $0xb8] sm:$0xff]  ;;  %786 = vmatpush.bf16.msra.mxu1 %v1441_v1  ;;  %v1448_v6 = vld [vmem:[#allocation5 + $0xb0] sm:$0xff]  ;;  %v1439_v9 = vld [vmem:[#allocation5 + $0x68] sm:$0xff]  ;;  %s1056_s27 = sshll.u32 %s409_s11, 4  ;;  %s1058_s25 = sshll.u32 %s1054_s16, 4  ;;  %s1057_s27 = int_to_ptr.vmem [resolvable:$true] %s1056_s27  ;;  %s1059_s25 = int_to_ptr.hbm [resolvable:$true] %s1058_s25 }
  0x5e   : > { %v1457_v5 = vld [vmem:[#allocation5 + $0xf8] sm:$0xff]  ;;  %799 = vmatpush.bf16.msra.mxu2 %v1449_v2  ;;  %v1456_v7 = vld [vmem:[#allocation5 + $0xf0] sm:$0xff]  ;;  %v1447_v10 = vld [vmem:[#allocation5 + $0xa8] sm:$0xff]  ;;  %s1044_s12 = scalar_lea.sflag [#allocation4], %s2000_s21  ;;  %s1741_s18 = sshra.s32 %s1059_s25, 4  ;;  %s1742_s18 = int_to_ptr.hbm [resolvable:$true] %s1741_s18 }
  0x5f   : > { %812 = vmatpush.bf16.msra.mxu3 %v1457_v5  ;;  %v1455_v11 = vld [vmem:[#allocation5 + $0xe8] sm:$0xff]  ;;  %v1430_v12 = vld [vmem:[#allocation5 + $0x20] sm:$0xff]  ;;  %v1429_v16 = vld [vmem:[#allocation5 + $0x18] sm:$0xff]  ;;  %s1743_s14 = scalar_lea.hbm %s1742_s18, 8  ;;  %s1747_s0 = scalar_lea.hbm %s2081_s8, 32 }
  0x60   : > { %774 = vmatpush.bf16.msra.mxu0 %v1432_v3  ;;  %v1438_v13 = vld [vmem:[#allocation5 + $0x60] sm:$0xff]  ;;  %v1437_v17 = vld [vmem:[#allocation5 + $0x58] sm:$0xff]  ;;  %v1428_v20 = vld [vmem:[#allocation5 + $0x10] sm:$0xff]  ;;  %p1744_p12 = scmp.ne.s32.totalorder %s1742_s18, %s1743_s14  ;;  %p1748_p9 = scmp.lt.s32.totalorder %s1742_s18, %s2081_s8 }
  0x61   : > { %787 = vmatpush.bf16.msra.mxu1 %v1440_v4  ;;  %v1446_v14 = vld [vmem:[#allocation5 + $0xa0] sm:$0xff]  ;;  %v1445_v18 = vld [vmem:[#allocation5 + $0x98] sm:$0xff]  ;;  %v1436_v21 = vld [vmem:[#allocation5 + $0x50] sm:$0xff]  ;;  %p1749_p5 = scmp.lt.s32.totalorder %s1747_s0, %s1743_s14 }
  0x62   : > { %800 = vmatpush.bf16.msra.mxu2 %v1448_v6  ;;  %v1454_v15 = vld [vmem:[#allocation5 + $0xe0] sm:$0xff]  ;;  %v1453_v19 = vld [vmem:[#allocation5 + $0xd8] sm:$0xff]  ;;  %v1444_v22 = vld [vmem:[#allocation5 + $0x90] sm:$0xff]  ;;  %p1745_p1 = pnand %p1744_p12, %p1925_p13 }
  0x63   : > { %813 = vmatpush.bf16.msra.mxu3 %v1456_v7  ;;  %v1452_v23 = vld [vmem:[#allocation5 + $0xd0] sm:$0xff]  ;;  %v1427_v24 = vld [vmem:[#allocation5 + $0x8] sm:$0xff]  ;;  %v1355_v27 = vld [vmem:[#allocation5 + $0x140] sm:$0xf]  ;;  %p1750_p10 = por %p1749_p5, %p1748_p9 }
  0x64   : > { %775 = vmatpush.bf16.msra.mxu0 %v1431_v8  ;;  %v1435_v25 = vld [vmem:[#allocation5 + $0x48] sm:$0xff]  ;;  %v1466_v28 = vld [vmem:[#allocation5 + $0x140] sm:$0x10]  ;;  %v412_v30 = vld [vmem:[%s2003_s9 + $0x8] sm:$0xff]  ;;  %p1746_p6 = pneg %p1745_p1 }
  0x65   : > { %788 = vmatpush.bf16.msra.mxu1 %v1439_v9  ;;  %v411_v26 = vld [vmem:[%s2003_s9] sm:$0xff]  ;;  %v1356_v34 = vor.u32 %v1466_v28, %v1355_v27  ;;  %v1426_v35 = vld [vmem:[#allocation5] sm:$0xff]  ;;  %v505_v37 = vunpack.c.l.b16 %v412_v30  ;;  %v1465_v38 = vld [vmem:[#allocation5 + $0x138] sm:$0xff]  ;;  %v506_v40 = vunpack.c.h.b16 %v412_v30 }
  0x66   : > { %801 = vmatpush.bf16.msra.mxu2 %v1447_v10  ;;  %v1443_v29 = vld [vmem:[#allocation5 + $0x88] sm:$0xff]  ;;  %v503_v32 = vunpack.c.l.b16 %v411_v26  ;;  %v504_v33 = vunpack.c.h.b16 %v411_v26  ;;  %v1434_v36 = vld [vmem:[#allocation5 + $0x40] sm:$0xff]  ;;  %v1464_v46 = vld [vmem:[#allocation5 + $0x130] sm:$0xff]  ;;  %p1751_p11 = pnand %p1750_p10, %p1746_p6 }
  0x67   : > { %814 = vmatpush.bf16.msra.mxu3 %v1455_v11  ;;  %v1451_v31 = vld [vmem:[#allocation5 + $0xc8] sm:$0xff]  ;;  %v1442_v39 = vld [vmem:[#allocation5 + $0x80] sm:$0xff]  ;;  %v771_v44 = vsel %vm769_vm0, %v1356_v34, 0  ;;  %v511_v45 = vpack.c.b16 %v505_v37, %v505_v37  ;;  %v512_v47 = vpack.c.b16 %v506_v40, %v506_v40  ;;  %v1461_v52 = vld [vmem:[#allocation5 + $0x118] sm:$0xff] }
  0x68   : > { %776 = vmatpush.bf16.msra.mxu0 %v1430_v12  ;;  %v1450_v41 = vld [vmem:[#allocation5 + $0xc0] sm:$0xff]  ;;  %v509_v42 = vpack.c.b16 %v503_v32, %v503_v32  ;;  %v510_v43 = vpack.c.b16 %v504_v33, %v504_v33  ;;  %v1463_v48 = vld [vmem:[#allocation5 + $0x128] sm:$0xff]  ;;  %v1460_v54 = vld [vmem:[#allocation5 + $0x110] sm:$0xff] }
  0x69   : > { %789 = vmatpush.bf16.msra.mxu1 %v1438_v13  ;;  %v413_v49 = vld [vmem:[%s2003_s9 + $0x10] sm:$0xff]  ;;  %v1459_v55 = vld [vmem:[#allocation5 + $0x108] sm:$0xff]  ;;  %v1472_v61 = vld [vmem:[#allocation7 + $0x28] sm:$0xff] }
  0x6a   : > { %802 = vmatpush.bf16.msra.mxu2 %v1446_v14  ;;  %v1462_v50 = vld [vmem:[#allocation5 + $0x120] sm:$0xff]  ;;  %v508_v51 = vunpack.c.h.b16 %v413_v49  ;;  %v507_v56 = vunpack.c.l.b16 %v413_v49  ;;  %v1473_v60 = vld [vmem:[#allocation7 + $0x30] sm:$0xff]  ;;  %v1471_v62 = vld [vmem:[#allocation7 + $0x20] sm:$0xff] }
  0x6b   : > { %815 = vmatpush.bf16.msra.mxu3 %v1454_v15  ;;  %v1458_v57 = vld [vmem:[#allocation5 + $0x100] sm:$0xff]  ;;  %v1469_v0 = vld [vmem:[#allocation7 + $0x10] sm:$0xff]  ;;  %v1468_v1 = vld [vmem:[#allocation7 + $0x8] sm:$0xff] }
  0x6c   : > { %777 = vmatpush.bf16.msra.mxu0 %v1429_v16  ;;  %v514_v53 = vpack.c.b16 %v508_v51, %v508_v51  ;;  %v513_v58 = vpack.c.b16 %v507_v56, %v507_v56  ;;  %v1474_v59 = vld [vmem:[#allocation7 + $0x38] sm:$0xff]  ;;  %v1467_v4 = vld [vmem:[#allocation7] sm:$0xff]  ;;  %v1481_v9 = vld [vmem:[#allocation8 + $0x30] sm:$0xff] }
  0x6d   : > { %790 = vmatpush.bf16.msra.mxu1 %v1437_v17  ;;  %v1470_v63 = vld [vmem:[#allocation7 + $0x18] sm:$0xff]  ;;  %v1570_v11 = vld [vmem:[%s2075_s2] ss:$0 sm:$0xff]  ;;  %v1479_v16 = vld [vmem:[#allocation8 + $0x20] sm:$0xff] }
  0x6e   : > { %803 = vmatpush.bf16.msra.mxu2 %v1445_v18  ;;  %v1482_v5 = vld [vmem:[#allocation8 + $0x38] sm:$0xff]  ;;  %v1480_v12 = vld [vmem:[#allocation8 + $0x28] sm:$0xff] }
  0x6f   : > { %816 = vmatpush.bf16.msra.mxu3 %v1453_v19  ;;  %v1478_v19 = vld [vmem:[#allocation8 + $0x18] sm:$0xff]  ;;  %v1476_v30 = vld [vmem:[#allocation8 + $0x8] sm:$0xff] }
  0x70   : > { %778 = vmatpush.bf16.msra.mxu0 %v1428_v20  ;;  %v1571_v32 = vld [vmem:[%s2077_s4] ss:$0 sm:$0xff] }
  0x71   : > { %791 = vmatpush.bf16.msra.mxu1 %v1436_v21  ;;  %v1572_v40 = vld [vmem:[%s2079_s6] ss:$0 sm:$0xff] }
  0x72   : > { %804 = vmatpush.bf16.msra.mxu2 %v1444_v22  ;;  %v1477_v22 = vld [vmem:[#allocation8 + $0x10] sm:$0xff] }
  0x73   : > { %817 = vmatpush.bf16.msra.mxu3 %v1452_v23 }
  0x74   : > { %779 = vmatpush.bf16.msra.mxu0 %v1427_v24 }
  0x75   : > { %792 = vmatpush.bf16.msra.mxu1 %v1435_v25 }
  0x76   : > { %805 = vmatpush.bf16.msra.mxu2 %v1443_v29 }
  0x77   : > { %818 = vmatpush.bf16.msra.mxu3 %v1451_v31  ;;  %v1475_v31 = vld [vmem:[#allocation8] sm:$0xff] }
  0x78   : > { %780 = vmatpush.bf16.msra.mxu0 %v1426_v35  ;;  %v935_v35 = vld [vmem:[%s2020_s3] sm:$0xff] }
  0x79   : > { %793 = vmatpush.bf16.msra.mxu1 %v1434_v36 }
  0x7a   : > { %806 = vmatpush.bf16.msra.mxu2 %v1442_v39 }
  0x7b   : > { %819 = vmatpush.bf16.msra.mxu3 %v1450_v41  ;;  %781 = vmatmul.bf16.vlgmr.msra.gmra.mxu0 %v509_v42 }
  0x7c   : > { %825 = vmatpush.bf16.msrb.mxu0 %v1465_v38  ;;  %794 = vmatmul.bf16.vlgmr.msra.gmra.mxu1 %v510_v43 }
  0x7d   : > { %845 = vmatpush.bf16.msrb.mxu1 %v771_v44  ;;  %807 = vmatmul.bf16.vlgmr.msra.gmra.mxu2 %v511_v45 }
  0x7e   : > { %820 = vmatmul.bf16.vlgmr.msra.gmra.mxu3 %v512_v47  ;;  %921 = vmatpush.bf16.msrb.mxu2 %v1474_v59 }
  0x7f   : > { %1006 = vmatpush.bf16.msrb.mxu3 %v1482_v5 }
  0x80   : > { %826 = vmatpush.bf16.msrb.mxu0 %v1464_v46 }
  0x82   : > { %922 = vmatpush.bf16.msrb.mxu2 %v1473_v60 }
  0x83   : > { %1007 = vmatpush.bf16.msrb.mxu3 %v1481_v9 }
  0x84   : > { %827 = vmatpush.bf16.msrb.mxu0 %v1463_v48 }
  0x86   : > { %923 = vmatpush.bf16.msrb.mxu2 %v1472_v61 }
  0x87   : > { %1008 = vmatpush.bf16.msrb.mxu3 %v1480_v12 }
  0x88   : > { %828 = vmatpush.bf16.msrb.mxu0 %v1462_v50 }
  0x8a   : > { %924 = vmatpush.bf16.msrb.mxu2 %v1471_v62 }
  0x8b   : > { %1009 = vmatpush.bf16.msrb.mxu3 %v1479_v16 }
  0x8c   : > { %829 = vmatpush.bf16.msrb.mxu0 %v1461_v52  ;;  %1357 = vmatmul.msk.bf16.vlgmr.msrb.gmra.mxu1 %vm765_vm1, %v514_v53 }
  0x8e   : > { %925 = vmatpush.bf16.msrb.mxu2 %v1470_v63 }
  0x8f   : > { %1010 = vmatpush.bf16.msrb.mxu3 %v1478_v19 }
  0x90   : > { %830 = vmatpush.bf16.msrb.mxu0 %v1460_v54 }
  0x92   : > { %926 = vmatpush.bf16.msrb.mxu2 %v1469_v0 }
  0x93   : > { %1011 = vmatpush.bf16.msrb.mxu3 %v1477_v22 }
  0x94   : > { %831 = vmatpush.bf16.msrb.mxu0 %v1459_v55 }
  0x96   : > { %927 = vmatpush.bf16.msrb.mxu2 %v1468_v1 }
  0x97   : > { %1012 = vmatpush.bf16.msrb.mxu3 %v1476_v30 }
  0x98   : > { %832 = vmatpush.bf16.msrb.mxu0 %v1458_v57 }
  0x9a   : > { %928 = vmatpush.bf16.msrb.mxu2 %v1467_v4 }
  0x9b   : > { %833 = vmatmul.bf16.vlgmr.msrb.gmra.mxu0 %v513_v58  ;;  %1013 = vmatpush.bf16.msrb.mxu3 %v1475_v31 }
  0xf8   : > { %v782_v2 = vpop.f32.mrf.mxu0 }
  0xf9   : > { %v795_v3 = vpop.f32.mrf.mxu1  ;;  %v783_v14 = vadd.f32 %v1570_v11, %v782_v2 }
  0xfb   : > { %v796_v18 = vadd.f32 %v795_v3, %v783_v14 }
 0x100   : > { %v808_v6 = vpop.f32.mrf.mxu2  ;;  %v784_v7 = vpop.f32.mrf.mxu0 }
 0x101   : > { %v797_v8 = vpop.f32.mrf.mxu1  ;;  %v821_v10 = vpop.f32.mrf.mxu3  ;;  %v809_v20 = vadd.f32 %v808_v6, %v796_v18 }
 0x103   : > { %v822_v23 = vadd.f32 %v821_v10, %v809_v20 }
 0x108   : > { %v810_v13 = vpop.f32.mrf.mxu2 }
 0x109   : > { %v847_v15 = vpop.f32.mrf.mxu1  ;;  %v823_v17 = vpop.f32.mrf.mxu3 }
 0x111   : > { %v849_v21 = vpop.f32.mrf.mxu1 }
 0x118   : > { %v834_v24 = vpop.f32.mrf.mxu0 }
 0x119   : > { %v835_v25 = vadd.f32 %v834_v24, %v822_v23 }
 0x11b   : > { %v848_v26 = vadd.f32 %v847_v15, %v835_v25 }
 0x11d   : > { %v851_v27 = vmax.f32 %v848_v26, 0.0 }
 0x11f   : > { %v852_v28 = vpack.c.bf16 %v851_v27, %v851_v27 }
 0x120   : > { %v836_v29 = vpop.f32.mrf.mxu0 }
 0x121   : > { %929 = vmatmul.bf16.vlgmr.msrb.gmra.mxu2 %v852_v28 }
 0x1a4   : > { %v930_v33 = vpop.f32.mrf.mxu2 }
 0x1a5   : > { %v931_v34 = vadd.f32 %v1571_v32, %v930_v33 }
 0x1a7   : > { %v934_v36 = vmax.f32 %v931_v34, 0.0 }
 0x1a9   : > { %v936_v37 = vmul.f32 %v935_v35, %v934_v36 }
 0x1ab   : > { %v937_v38 = vpack.c.bf16 %v936_v37, %v936_v37 }
 0x1ac   : > { %v932_v39 = vpop.f32.mrf.mxu2 }
 0x1ad   : > { %1014 = vmatmul.bf16.vlgmr.msrb.gmra.mxu3 %v937_v38 }
 0x230   : > { %v1015_v41 = vpop.f32.mrf.mxu3 }
 0x231   : > { %v1016_v42 = vadd.f32 %v1572_v40, %v1015_v41 }
 0x233   : > { %1019 = vmax.xlane.f32.xlu0 %v1016_v42 }
 0x238   : > { %v1017_v43 = vpop.f32.mrf.mxu3 }
 0x2a6   : > { %v1020_v44 = vpop.xlane.xlu0 %1019 }
 0x2a7   : > { %v1021_v45 = vsub.f32 %v1016_v42, %v1020_v44 }
 0x2a9   : > { %v1022_v46 = vmul.f32 1.442695, %v1021_v45 }
 0x2ab   : > { %1573 = vpow2.f32 %v1022_v46 }
 0x2b1   : > { %v1574_v47 = vpop.eup %1573 }
 0x2b2   : > { %1024 = vadd.xlane.f32.xlu0 %v1574_v47 }
 0x325   : > { %v1025_v48 = vpop.xlane.xlu0 %1024 }
 0x326   : > { %1575 = vrcp.f32 %v1025_v48  ;;  %v1037_v52 = vand.u32 2147483648, %v1025_v48  ;;  %v1035_v54 = vand.u32 2147483647, %v1025_v48  ;;  %vm1031_vm3 = vweird.f32 %v1025_v48 }
 0x328   : > { %v1038_v56 = vor.u32 1.1754944e-38, %v1037_v52  ;;  %vm1036_vm5 = vcmp.eq.f32.partialorder %v1035_v54, 8.507059e+37 }
 0x32c   : > { %v1576_v49 = vpop.eup %1575 }
 0x32d   : > { %v1027_v50 = vmul.f32 %v1576_v49, %v1025_v48  ;;  %vm1032_vm2 = vweird.f32 %v1576_v49 }
 0x32e   : > { %vm1033_vm4 = vmor %vm1031_vm3, %vm1032_vm2 }
 0x32f   : > { %v1028_v51 = vsub.f32 1.0, %v1027_v50 }
 0x331   : > { %v1029_v53 = vmul.f32 %v1576_v49, %v1028_v51 }
 0x333   : > { %v1030_v55 = vadd.f32 %v1576_v49, %v1029_v53 }
 0x335   : > { %v1034_v57 = vsel %vm1033_vm4, %v1576_v49, %v1030_v55 }
 0x336   : > { %v1039_v58 = vsel %vm1036_vm5, %v1038_v56, %v1034_v57 }
 0x337   : > { %v1041_v59 = vmul.f32 %v1574_v47, %v1039_v58 }
 0x339   : > { %1042 = vst [vmem:[%s409_s11] sm:$0xff] %v1041_v59 }
 0x33a   : > { %1754 = shalt.err (!%p1751_p11)
}
 0x33b   : > { %1502 = dma.vmem_to_hbm [thread:$0]  (%p1925_p13), %s1057_s27, 128, %s1059_s25, %s1044_s12  }
 0x33c PF: > { %s2119_s21 = sld [smem:[#allocation17_spill]]  ;;  %p1532_p0 = scmp.ge.s32.totalorder %s1805_s30, 2 }
 0x33e   : > { %p1522_p7 = pnand %p1532_p0, %p1931_p4 }
 0x340   : > { %p1523_p3 = pneg %p1522_p7 }
 0x342   : > { %s1070_s10 = sand.u32 1, %s2119_s21  }
 0x343   : > { %s1071_s15 = scalar_lea.sflag [#allocation4], %s1070_s10 }
 0x344   : > { %1788 = dma.done.wait (%p1523_p3), %s1071_s15, 128  }
 0x345   : > { %1790 = vsyncadd (%p1523_p3), %s1071_s15, 4294967168  ;;  %s2121_s30 = sld [smem:[#allocation18_spill]]  ;;  %s2123_s27 = smov %s1797_s28 }
 0x346   : > { %s2122_s20 = sld [smem:[#allocation19_spill]]  ;;  %s2124_s28 = smov %s1801_s29 }
 0x34b   : > { %p23_p8 = scmp.ge.s32.totalorder %s2121_s30, 6  }
 0x34c   : > { %s2125_s29 = smov %s2122_s20 }
 0x34d   :  { %25 = sbr.rel (!%p23_p8) target bundleno = 11 (0xb), region = 120 }
 0x352   :  { %1077 = vsyncpa [#allocation3], 1 }
 0x353   :  { %1079 = vsyncpa [#allocation3 + $0x1], 1 }
 0x354   :  { %1080 = vsyncpa [#allocation6], 1 }
 0x355   :  { %1081 = vsyncpa [#allocation9], 1 }
 0x356   :  { %1082 = vsyncpa [#allocation4], 1 }
 0x357   :  { %1084 = vsyncpa [#allocation4 + $0x1], 1 }

</bundles_post_ra>
